<compile_context>
chip_gen: v7x
topology: tpu7x:2x2x1
jax: 0.10.0
libtpu: 0.0.40
codegen_flags: <defaults>
</compile_context>

<pallas_src>
import math
import functools

import jax
import jax.numpy as jnp
from jax import lax
from jax.experimental import pallas as pl
from jax.experimental.pallas import tpu as pltpu


def make_positional_encoding_table(d_model, max_len=5000, dtype=jnp.float32):
    """Deterministic PE buffer, identical to the PyTorch __init__."""
    position = jnp.arange(max_len, dtype=jnp.float32)[:, None]            # (max_len, 1)
    div_term = jnp.exp(
        jnp.arange(0, d_model, 2, dtype=jnp.float32) * (-math.log(10000.0) / d_model)
    )                                                                      # (d_model//2,)
    pe = jnp.zeros((max_len, d_model), jnp.float32)
    pe = pe.at[:, 0::2].set(jnp.sin(position * div_term))
    pe = pe.at[:, 1::2].set(jnp.cos(position * div_term))
    return pe.astype(dtype)


def _pe_kernel(seed_ref, x_ref, pe_ref, o_ref, *, p, training, sg, dg, ts):
    """One grid step = one (batch, seq-tile): out = dropout(x + pe)."""
    x = x_ref[...]                       # (1, ts, dg)
    pe = pe_ref[...]                     # (ts, dg)

    if not (training and p > 0.0):
        # Eval / p==0: pure add in the native dtype (pe pre-cast in the wrapper).
        o_ref[...] = x + pe[None]
        return

    # Training: PyTorch-style inverted dropout (keep with prob 1-p, scale 1/(1-p)).
    # Counter-based hash PRNG (lowbias32) over the global element index, mixed
    # with the seed.  Portable (plain jnp uint32 ops) and unique per element,
    # so tiling over (b, s) never repeats a random stream.
    y = x.astype(jnp.float32) + pe.astype(jnp.float32)[None]

    b = pl.program_id(0)
    si = pl.program_id(1)
    row = lax.broadcasted_iota(jnp.int32, (1, ts, dg), 1)
    col = lax.broadcasted_iota(jnp.int32, (1, ts, dg), 2)
    gidx = ((b * sg + si * ts + row) * dg + col).astype(jnp.uint32)

    key = seed_ref[0].astype(jnp.uint32) * jnp.uint32(0x9E3779B9)
    h = gidx ^ key
    h = h ^ (h >> 16)
    h = h * jnp.uint32(0x7FEB352D)
    h = h ^ (h >> 15)
    h = h * jnp.uint32(0x846CA68B)
    h = h ^ (h >> 16)

    # keep iff h >= p * 2^32  => P(keep) = 1 - p (pure uint32 compare, no float convert)
    threshold = min(int(p * 4294967296.0), 4294967295)
    keep = h >= jnp.uint32(threshold)

    y = jnp.where(keep, y * jnp.float32(1.0 / (1.0 - p)), jnp.float32(0.0))
    o_ref[...] = y.astype(o_ref.dtype)


@functools.partial(jax.jit, static_argnames=("p", "training"))
def positional_encoding_forward(x, pe, seed, *, p=0.1, training=False):
    """x: (B, S, D), pe: (max_len, D), seed: int32[1]."""
    B, S, D = x.shape
    itemsize = jnp.dtype(x.dtype).itemsize

    # Lane densification: group g consecutive rows so the last dim is a multiple
    # of 128 (stores become full-lane).  Falls back to g=1 when S % g != 0.
    g = 128 // math.gcd(D, 128)
    if S % g != 0:
        g = 1
    sg, dg = S // g, D * g

    xg = x.reshape(B, sg, dg)
    # pe slice pre-cast to x.dtype; tiny one-time copy (S*D elems) vs main traffic.
    peg = pe[:S].astype(x.dtype).reshape(sg, dg)

    # Tile the (grouped) sequence axis: ~1 MiB per x block -> 2x(x) + 2x(out) + pe
    # is a few MiB, safely inside the default scoped VMEM on v5e/v6e/v7x while
    # still amortizing per-grid-step overhead.
    ts = max(1, (1 << 20) // max(1, dg * itemsize))
    ts = min(ts, sg)
    if sg >= 8:
        ts = max(8, (ts // 8) * 8)          # keep sublane dim a multiple of 8
    grid = (B, pl.cdiv(sg, ts))

    kernel = functools.partial(
        _pe_kernel, p=float(p), training=bool(training), sg=sg, dg=dg, ts=ts
    )
    cost = pl.CostEstimate(
        flops=B * S * D,
        bytes_accessed=(2 * B * S * D + S * D) * itemsize,
        transcendentals=0,
    )

    out = pl.pallas_call(
        kernel,
        out_shape=jax.ShapeDtypeStruct((B, sg, dg), x.dtype),
        grid_spec=pltpu.PrefetchScalarGridSpec(
            num_scalar_prefetch=1,           # seed lands in SMEM
            grid=grid,
            in_specs=[
                pl.BlockSpec((1, ts, dg), lambda b, s, seed: (b, s, 0)),   # x
                pl.BlockSpec((ts, dg), lambda b, s, seed: (s, 0)),         # pe
            ],
            out_specs=pl.BlockSpec((1, ts, dg), lambda b, s, seed: (b, s, 0)),
        ),
        compiler_params=pltpu.CompilerParams(
            dimension_semantics=("parallel", "parallel"),   # independent tiles, no accumulator
        ),
        cost_estimate=cost,
    )(seed, xg, peg)

    return out.reshape(B, S, D)


if __name__ == "__main__":
    # Small shapes implied by the forward: (batch, seq, d_model)
    B, S, D = 2, 8, 32
    key = jax.random.PRNGKey(0)
    x = jax.random.normal(key, (B, S, D), dtype=jnp.float32)
    pe = make_positional_encoding_table(D, max_len=5000)
    seed = jnp.array([0], dtype=jnp.int32)

    # Eval mode (dropout = identity) -- deterministic, check against reference.
    out_eval = positional_encoding_forward(x, pe, seed, p=0.1, training=False)
    jax.block_until_ready(out_eval)
    ref = x + pe[:S][None]
    assert out_eval.shape == (B, S, D)
    assert jnp.allclose(out_eval, ref, atol=1e-5, rtol=1e-5), "mismatch vs reference"

    # Training mode (inverted dropout) -- kept elements must equal ref / (1 - p).
    p = 0.1
    out_train = positional_encoding_forward(x, pe, seed, p=p, training=True)
    jax.block_until_ready(out_train)
    assert out_train.shape == (B, S, D)
    kept = out_train != 0.0
    assert jnp.allclose(out_train[kept], (ref / (1.0 - p))[kept], atol=1e-5, rtol=1e-5)
    # sanity: dropout should not zero out the majority of elements at p=0.1
    assert float(jnp.mean(1.0 - kept.astype(jnp.float32))) < 0.5

    print("KERNEL_OK")
</pallas_src>

<mosaic_0001>
module attributes {stable_mosaic.version = 11 : i64} {
  func.func @_pe_kernel(%arg0: i32, %arg1: i32, %arg2: memref<1xi32, #tpu.memory_space<smem>>, %arg3: memref<1x2x128xf32, #tpu.memory_space<vmem>>, %arg4: memref<2x128xf32, #tpu.memory_space<vmem>>, %arg5: memref<1x2x128xf32, #tpu.memory_space<vmem>>) attributes {dimension_semantics = [#tpu.dimension_semantics<parallel>, #tpu.dimension_semantics<parallel>], iteration_bounds = array<i64: 2, 1>, scalar_prefetch = 1 : i64, scratch_operands = 0 : i64, tpu.core_type = #tpu.core_type<tc>, window_params = [{transform_indices = @transform_0, window_bounds = array<i64: 1, 2, 128>}, {transform_indices = @transform_1, window_bounds = array<i64: 2, 128>}, {transform_indices = @transform_2, window_bounds = array<i64: 1, 2, 128>}]} {
    %c0 = arith.constant 0 : index
    %c0_0 = arith.constant 0 : index
    %c0_1 = arith.constant 0 : index
    %0 = vector.load %arg3[%c0, %c0_0, %c0_1] : memref<1x2x128xf32, #tpu.memory_space<vmem>>, vector<1x2x128xf32>
    %c0_2 = arith.constant 0 : index
    %c0_3 = arith.constant 0 : index
    %1 = vector.load %arg4[%c0_2, %c0_3] : memref<2x128xf32, #tpu.memory_space<vmem>>, vector<2x128xf32>
    %2 = vector.shape_cast %1 : vector<2x128xf32> to vector<1x2x128xf32>
    %3 = arith.addf %0, %2 : vector<1x2x128xf32>
    %c0_4 = arith.constant 0 : index
    %c0_5 = arith.constant 0 : index
    %c0_6 = arith.constant 0 : index
    %4 = vector.load %arg5[%c0_4, %c0_5, %c0_6] : memref<1x2x128xf32, #tpu.memory_space<vmem>>, vector<1x2x128xf32>
    tpu.vector_store %arg5[%c0_4, %c0_5, %c0_6], %3 {strides = array<i32>} : memref<1x2x128xf32, #tpu.memory_space<vmem>>, vector<1x2x128xf32>,
    return
  }
  func.func @transform_0(%arg0: i32, %arg1: i32, %arg2: memref<1xi32, #tpu.memory_space<smem>>) -> (i32, i32, i32) {
    %c0_i32 = arith.constant 0 : i32
    %c0_i32_0 = arith.constant 0 : i32
    return %arg0, %arg1, %c0_i32 : i32, i32, i32
  }
  func.func @transform_1(%arg0: i32, %arg1: i32, %arg2: memref<1xi32, #tpu.memory_space<smem>>) -> (i32, i32) {
    %c0_i32 = arith.constant 0 : i32
    %c0_i32_0 = arith.constant 0 : i32
    return %arg1, %c0_i32 : i32, i32
  }
  func.func @transform_2(%arg0: i32, %arg1: i32, %arg2: memref<1xi32, #tpu.memory_space<smem>>) -> (i32, i32, i32) {
    %c0_i32 = arith.constant 0 : i32
    %c0_i32_0 = arith.constant 0 : i32
    return %arg0, %arg1, %c0_i32 : i32, i32, i32
  }
}

</mosaic_0001>

<bundles_post_ra>
// kernel: positional_encoding_forward.1
= control target key start
LH: loop header
LB: loop body
LE: loop exit
PB: predicated region body
PF: predicated region fallthrough
CT: control target
= control target key end

     0   :  { %s361_s12 = smov 0   ;;  %s333_s13 = smov 0   ;;  %s375_s0 = inlined_call_operand.<no memory space> [shape: s32[1], index: 0, kind: input, shape index: {}]   ;;  %s376_s1 = inlined_call_operand.vmem [shape: f32[2,2,128], index: 1, kind: input, shape index: {}]   ;;  %s377_s2 = inlined_call_operand.vmem [shape: f32[2,128], index: 2, kind: input, shape index: {}]   ;;  %s378_s3 = inlined_call_operand.vmem [shape: f32[2,2,128], index: 3, kind: output, shape index: {}]  }
   0x1   :  { %s337_s14 = smov 0  }
   0x2 LB: > { %s26_s0 = sadd.s32 1, %s335_s13  ;;  %p288_p0 = scmp.ge.s32.totalorder %s339_s14, 1  ;;  %s339_s14 = sphi %s337_s14, %s14_s14   ;;  %s335_s13 = sphi %s333_s13, %s334_s13   ;;  %s331_s12 = sphi %s361_s12, %s379_s12  }
   0x3   : > { %p28_p1 = scmp.ge.s32.totalorder %s26_s0, 2  ;;  %p141_p2 = scmp.lt.s32.totalorder %s339_s14, 3 }
   0x5   : > { %s381_s0 = smov (%p28_p1, %s26_s0), 0  ;;  %p142_p3 = pnand %p288_p0, %p141_p2 }
   0x6   : > { %p171_p4 = scmp.lt.s32.totalorder (!%p142_p3), %s331_s12, 1  ;;  %v190_v0 = vld [vmem:[%s377_s2] sm:$0x3] (!%p142_p3) }
   0x7   : > { %145 = sbr.rel (%p142_p3) target bundleno = 21 (0x15), region = 28 }
   0xe   : > { %s383_s12 = smov (!%p171_p4, %s331_s12), 1 }
   0xf   : > { %s289_s15 = sshll.u32 %s383_s12, 1 }
  0x10   : > { %s177_s20 = scalar_lea.vmem %s376_s1, %s289_s15  ;;  %s188_s23 = scalar_lea.vmem %s378_s3, %s289_s15 }
  0x11   : > { %v189_v1 = vld [vmem:[%s177_s20] sm:$0x3] }
  0x12   : > { %v191_v2 = vadd.f32 %v190_v0, %v189_v1 }
  0x14   : > { %192 = vst [vmem:[%s188_s23] sm:$0x3] %v191_v2 }
  0x15 PF: > { %s14_s14 = sadd.s32 1, %s339_s14   ;;  %s379_s12 = smov %s335_s13 }
  0x16   : > { %p11_p5 = scmp.ge.s32.totalorder %s14_s14, 4   ;;  %s334_s13 = smov %s381_s0  }
  0x18   :  { %13 = sbr.rel (!%p11_p5) target bundleno = 2 (0x2), region = 61 }

</bundles_post_ra>
